<compile_context>
chip_gen: v7x
topology: tpu7x:2x2x1
jax: 0.10.0
libtpu: 0.0.40
codegen_flags: <defaults>
</compile_context>

<pallas_src>
import jax
import jax.numpy as jnp
from jax import lax
from jax.experimental import pallas as pl
from jax.experimental.pallas import tpu as pltpu
import numpy as np


def _lstm_fc_kernel(pre_ref, whh_ref, wfc_ref, bfc_ref, out_ref):
    """Whole LSTM recurrence + final fc in one invocation.

    pre_ref : (T, B, 4*Hp)  precomputed x@W_ih^T + (b_ih+b_hh), gate order (i,f,o,g),
                            gate-padded to Hp lanes, time-major
    whh_ref : (Hp, 4*Hp)    padded, gate-reordered, transposed recurrent weights
    wfc_ref : (1, Hp)       padded fc weight row
    bfc_ref : (1, 1)        fc bias
    out_ref : (B, 1)        final output
    """
    T, B, _ = pre_ref.shape
    Hp = whh_ref.shape[0]

    # Hoist loop-invariant loads out of the recurrence.
    whh = whh_ref[...]        # (Hp, 4Hp)
    wfc = wfc_ref[...]        # (1, Hp)
    bfc = bfc_ref[...]        # (1, 1)

    h0 = jnp.zeros((B, Hp), jnp.float32)
    c0 = jnp.zeros((B, Hp), jnp.float32)

    def step(t, carry):
        h, c = carry
        # Only the h -> h recurrence touches the MXU per step.
        gates = pre_ref[t] + jnp.dot(h, whh, preferred_element_type=jnp.float32)  # (B, 4Hp)
        # Gate order is (i, f, o, g): one sigmoid over 3*Hp lanes, one tanh over Hp.
        sig = jax.nn.sigmoid(gates[:, 0:3 * Hp])
        i_g = sig[:, 0 * Hp:1 * Hp]
        f_g = sig[:, 1 * Hp:2 * Hp]
        o_g = sig[:, 2 * Hp:3 * Hp]
        g_g = jnp.tanh(gates[:, 3 * Hp:4 * Hp])
        c_new = f_g * c + i_g * g_g
        h_new = o_g * jnp.tanh(c_new)
        return (h_new, c_new)

    h_T, _ = lax.fori_loop(0, T, step, (h0, c0), unroll=True)

    # Final fc as a lane reduction (avoids a 1-lane-wide MXU pop).
    out_ref[...] = (
        jnp.sum(h_T * wfc, axis=-1, keepdims=True) + bfc
    ).astype(out_ref.dtype)


def lstm_model_forward(x, params):
    """x: (B, T, I) float32 -> (B, 1) float32. Matches PyTorch LSTMModel.forward."""
    B, T, I = x.shape
    H = params["w_hh"].shape[1]              # w_hh: (4H, H)
    Hp = ((H + 127) // 128) * 128            # per-gate lane padding (50 -> 128)
    perm = jnp.array([0, 1, 3, 2])           # PyTorch (i,f,g,o) -> kernel (i,f,o,g)

    # ---- Precompute input projection for all timesteps (outside the recurrence).
    b = params["b_ih"] + params["b_hh"]                       # (4H,)
    pre = jnp.einsum("bti,gi->btg", x, params["w_ih"]) + b    # (B, T, 4H)
    pre = pre.reshape(B, T, 4, H)[:, :, perm, :]              # gate reorder
    pre = jnp.pad(pre, ((0, 0), (0, 0), (0, 0), (0, Hp - H))) # (B, T, 4, Hp), pads are 0
    pre = pre.reshape(B, T, 4 * Hp)
    pre_tm = jnp.transpose(pre, (1, 0, 2))                    # (T, B, 4Hp) time-major

    # ---- Pad + gate-reorder + transpose recurrent weights: (4H, H) -> (Hp, 4Hp)
    whh = params["w_hh"].reshape(4, H, H)[perm]               # [g, j, k] = W_hh[g*H+j, k]
    whh = jnp.pad(whh, ((0, 0), (0, Hp - H), (0, Hp - H)))    # (4, Hp, Hp)
    whh_t = jnp.transpose(whh, (2, 0, 1)).reshape(Hp, 4 * Hp) # [k, g*Hp+j]

    # ---- Padded fc weights / bias.
    wfc = jnp.pad(params["w_fc"], ((0, 0), (0, Hp - H)))      # (1, Hp)
    bfc = params["b_fc"].reshape(1, 1)

    grid_spec = pltpu.PrefetchScalarGridSpec(
        num_scalar_prefetch=0,
        grid=(1,),                                            # single invocation
        in_specs=[
            pl.BlockSpec((T, B, 4 * Hp), lambda i: (0, 0, 0)),  # all timesteps resident
            pl.BlockSpec((Hp, 4 * Hp), lambda i: (0, 0)),       # W_hh^T (padded)
            pl.BlockSpec((1, Hp), lambda i: (0, 0)),            # W_fc row (padded)
            pl.BlockSpec((1, 1), lambda i: (0, 0)),             # b_fc
        ],
        out_specs=pl.BlockSpec((B, 1), lambda i: (0, 0)),
    )

    return pl.pallas_call(
        _lstm_fc_kernel,
        out_shape=jax.ShapeDtypeStruct((B, 1), jnp.float32),
        grid_spec=grid_spec,
        compiler_params=pltpu.CompilerParams(
            dimension_semantics=("arbitrary",),   # recurrence is inherently serial
        ),
    )(pre_tm, whh_t, wfc, bfc)


def lstm_model_reference(x, params):
    """Pure-JAX reference matching PyTorch nn.LSTM + nn.Linear semantics."""
    B, T, I = x.shape
    H = params["w_hh"].shape[1]
    wih_t = params["w_ih"].T
    whh_t = params["w_hh"].T
    b = params["b_ih"] + params["b_hh"]

    def step(carry, x_t):
        h, c = carry
        gates = x_t @ wih_t + h @ whh_t + b
        i_g = jax.nn.sigmoid(gates[:, 0 * H:1 * H])
        f_g = jax.nn.sigmoid(gates[:, 1 * H:2 * H])
        g_g = jnp.tanh(gates[:, 2 * H:3 * H])
        o_g = jax.nn.sigmoid(gates[:, 3 * H:4 * H])
        c = f_g * c + i_g * g_g
        h = o_g * jnp.tanh(c)
        return (h, c), None

    h0 = jnp.zeros((B, H), jnp.float32)
    c0 = jnp.zeros((B, H), jnp.float32)
    (hT, _), _ = lax.scan(step, (h0, c0), jnp.transpose(x, (1, 0, 2)))
    return hT @ params["w_fc"].T + params["b_fc"]


def init_params(key, input_size=1, hidden_size=50):
    """Deterministic init matching PyTorch param shapes (uniform(-k, k), k=1/sqrt(H))."""
    ks = jax.random.split(key, 6)
    k = 1.0 / np.sqrt(hidden_size)
    u = lambda kk, shape: jax.random.uniform(kk, shape, jnp.float32, -k, k)
    return {
        "w_ih": u(ks[0], (4 * hidden_size, input_size)),
        "w_hh": u(ks[1], (4 * hidden_size, hidden_size)),
        "b_ih": u(ks[2], (4 * hidden_size,)),
        "b_hh": u(ks[3], (4 * hidden_size,)),
        "w_fc": u(ks[4], (1, hidden_size)),
        "b_fc": u(ks[5], (1,)),
    }


if __name__ == "__main__":
    B, T, I, H = 2, 8, 1, 50   # batch=2, seq=8, input_size=1, hidden_size=50 (module default)

    key = jax.random.PRNGKey(0)
    k_x, k_p = jax.random.split(key)
    x = jax.random.normal(k_x, (B, T, I), jnp.float32)
    params = init_params(k_p, input_size=I, hidden_size=H)

    out = lstm_model_forward(x, params)
    out = jax.block_until_ready(out)

    ref = jax.block_until_ready(lstm_model_reference(x, params))
    assert out.shape == (B, 1), out.shape
    np.testing.assert_allclose(np.asarray(out), np.asarray(ref), rtol=1e-5, atol=1e-5)

    print("KERNEL_OK")
</pallas_src>

<mosaic_0001>
module attributes {stable_mosaic.version = 11 : i64} {
  func.func @_lstm_fc_kernel(%arg0: i32, %arg1: memref<8x2x512xf32, #tpu.memory_space<vmem>>, %arg2: memref<128x512xf32, #tpu.memory_space<vmem>>, %arg3: memref<1x128xf32, #tpu.memory_space<vmem>>, %arg4: memref<1x1xf32, #tpu.memory_space<vmem>>, %arg5: memref<2x1xf32, #tpu.memory_space<vmem>>) attributes {dimension_semantics = [#tpu.dimension_semantics<arbitrary>], iteration_bounds = array<i64: 1>, scalar_prefetch = 0 : i64, scratch_operands = 0 : i64, tpu.core_type = #tpu.core_type<tc>, window_params = [{pipeline_mode = #tpu.pipeline_mode<synchronous>, transform_indices = @transform_0, window_bounds = array<i64: 8, 2, 512>}, {pipeline_mode = #tpu.pipeline_mode<synchronous>, transform_indices = @transform_1, window_bounds = array<i64: 128, 512>}, {pipeline_mode = #tpu.pipeline_mode<synchronous>, transform_indices = @transform_2, window_bounds = array<i64: 1, 128>}, {pipeline_mode = #tpu.pipeline_mode<synchronous>, transform_indices = @transform_3, window_bounds = array<i64: 1, 1>}, {pipeline_mode = #tpu.pipeline_mode<synchronous>, transform_indices = @transform_4, window_bounds = array<i64: 2, 1>}]} {
    %c0 = arith.constant 0 : index
    %c0_0 = arith.constant 0 : index
    %0 = vector.load %arg2[%c0, %c0_0] : memref<128x512xf32, #tpu.memory_space<vmem>>, vector<128x512xf32>
    %c0_1 = arith.constant 0 : index
    %c0_2 = arith.constant 0 : index
    %1 = vector.load %arg3[%c0_1, %c0_2] : memref<1x128xf32, #tpu.memory_space<vmem>>, vector<1x128xf32>
    %c0_3 = arith.constant 0 : index
    %c0_4 = arith.constant 0 : index
    %2 = vector.load %arg4[%c0_3, %c0_4] : memref<1x1xf32, #tpu.memory_space<vmem>>, vector<1x1xf32>
    %cst = arith.constant 0.000000e+00 : f32
    %3 = vector.broadcast %cst : f32 to vector<2x128xf32>
    %cst_5 = arith.constant 0.000000e+00 : f32
    %4 = vector.broadcast %cst_5 : f32 to vector<2x128xf32>
    %c0_i32 = arith.constant 0 : i32
    %5 = arith.index_cast %c0_i32 : i32 to index
    %c0_6 = arith.constant 0 : index
    %c0_7 = arith.constant 0 : index
    %6 = vector.load %arg1[%5, %c0_6, %c0_7] : memref<8x2x512xf32, #tpu.memory_space<vmem>>, vector<1x2x512xf32>
    %7 = vector.shape_cast %6 : vector<1x2x512xf32> to vector<2x512xf32>
    %cst_8 = arith.constant dense<0.000000e+00> : vector<2x512xf32>
    %8 = tpu.matmul %3, %0, %cst_8 {dimension_numbers = #tpu.dot_dimension_numbers<[1], [0], [0], [1], [0, 0, 1, 1], [], []>} : vector<2x128xf32>, vector<128x512xf32>, vector<2x512xf32> -> vector<2x512xf32>
    %9 = arith.addf %7, %8 : vector<2x512xf32>
    %10 = vector.extract_strided_slice %9 {offsets = [0, 0], sizes = [2, 384], strides = [1, 1]} : vector<2x512xf32> to vector<2x384xf32>
    %11 = arith.negf %10 : vector<2x384xf32>
    %12 = math.exp %11 : vector<2x384xf32>
    %cst_9 = arith.constant 1.000000e+00 : f32
    %13 = vector.broadcast %cst_9 : f32 to vector<2x384xf32>
    %14 = arith.addf %13, %12 : vector<2x384xf32>
    %15 = arith.divf %13, %14 : vector<2x384xf32>
    %16 = vector.extract_strided_slice %15 {offsets = [0, 0], sizes = [2, 128], strides = [1, 1]} : vector<2x384xf32> to vector<2x128xf32>
    %17 = vector.extract_strided_slice %15 {offsets = [0, 128], sizes = [2, 128], strides = [1, 1]} : vector<2x384xf32> to vector<2x128xf32>
    %18 = vector.extract_strided_slice %15 {offsets = [0, 256], sizes = [2, 128], strides = [1, 1]} : vector<2x384xf32> to vector<2x128xf32>
    %19 = vector.extract_strided_slice %9 {offsets = [0, 384], sizes = [2, 128], strides = [1, 1]} : vector<2x512xf32> to vector<2x128xf32>
    %20 = math.tanh %19 : vector<2x128xf32>
    %21 = arith.mulf %17, %4 : vector<2x128xf32>
    %22 = arith.mulf %16, %20 : vector<2x128xf32>
    %23 = arith.addf %21, %22 : vector<2x128xf32>
    %24 = math.tanh %23 : vector<2x128xf32>
    %25 = arith.mulf %18, %24 : vector<2x128xf32>
    %c1_i32 = arith.constant 1 : i32
    %26 = arith.index_cast %c1_i32 : i32 to index
    %c0_10 = arith.constant 0 : index
    %c0_11 = arith.constant 0 : index
    %27 = vector.load %arg1[%26, %c0_10, %c0_11] : memref<8x2x512xf32, #tpu.memory_space<vmem>>, vector<1x2x512xf32>
    %28 = vector.shape_cast %27 : vector<1x2x512xf32> to vector<2x512xf32>
    %cst_12 = arith.constant dense<0.000000e+00> : vector<2x512xf32>
    %29 = tpu.matmul %25, %0, %cst_12 {dimension_numbers = #tpu.dot_dimension_numbers<[1], [0], [0], [1], [0, 0, 1, 1], [], []>} : vector<2x128xf32>, vector<128x512xf32>, vector<2x512xf32> -> vector<2x512xf32>
    %30 = arith.addf %28, %29 : vector<2x512xf32>
    %31 = vector.extract_strided_slice %30 {offsets = [0, 0], sizes = [2, 384], strides = [1, 1]} : vector<2x512xf32> to vector<2x384xf32>
    %32 = arith.negf %31 : vector<2x384xf32>
    %33 = math.exp %32 : vector<2x384xf32>
    %cst_13 = arith.constant 1.000000e+00 : f32
    %34 = vector.broadcast %cst_13 : f32 to vector<2x384xf32>
    %35 = arith.addf %34, %33 : vector<2x384xf32>
    %36 = arith.divf %34, %35 : vector<2x384xf32>
    %37 = vector.extract_strided_slice %36 {offsets = [0, 0], sizes = [2, 128], strides = [1, 1]} : vector<2x384xf32> to vector<2x128xf32>
    %38 = vector.extract_strided_slice %36 {offsets = [0, 128], sizes = [2, 128], strides = [1, 1]} : vector<2x384xf32> to vector<2x128xf32>
    %39 = vector.extract_strided_slice %36 {offsets = [0, 256], sizes = [2, 128], strides = [1, 1]} : vector<2x384xf32> to vector<2x128xf32>
    %40 = vector.extract_strided_slice %30 {offsets = [0, 384], sizes = [2, 128], strides = [1, 1]} : vector<2x512xf32> to vector<2x128xf32>
    %41 = math.tanh %40 : vector<2x128xf32>
    %42 = arith.mulf %38, %23 : vector<2x128xf32>
    %43 = arith.mulf %37, %41 : vector<2x128xf32>
    %44 = arith.addf %42, %43 : vector<2x128xf32>
    %45 = math.tanh %44 : vector<2x128xf32>
    %46 = arith.mulf %39, %45 : vector<2x128xf32>
    %c2_i32 = arith.constant 2 : i32
    %47 = arith.index_cast %c2_i32 : i32 to index
    %c0_14 = arith.constant 0 : index
    %c0_15 = arith.constant 0 : index
    %48 = vector.load %arg1[%47, %c0_14, %c0_15] : memref<8x2x512xf32, #tpu.memory_space<vmem>>, vector<1x2x512xf32>
    %49 = vector.shape_cast %48 : vector<1x2x512xf32> to vector<2x512xf32>
    %cst_16 = arith.constant dense<0.000000e+00> : vector<2x512xf32>
    %50 = tpu.matmul %46, %0, %cst_16 {dimension_numbers = #tpu.dot_dimension_numbers<[1], [0], [0], [1], [0, 0, 1, 1], [], []>} : vector<2x128xf32>, vector<128x512xf32>, vector<2x512xf32> -> vector<2x512xf32>
    %51 = arith.addf %49, %50 : vector<2x512xf32>
    %52 = vector.extract_strided_slice %51 {offsets = [0, 0], sizes = [2, 384], strides = [1, 1]} : vector<2x512xf32> to vector<2x384xf32>
    %53 = arith.negf %52 : vector<2x384xf32>
    %54 = math.exp %53 : vector<2x384xf32>
    %cst_17 = arith.constant 1.000000e+00 : f32
    %55 = vector.broadcast %cst_17 : f32 to vector<2x384xf32>
    %56 = arith.addf %55, %54 : vector<2x384xf32>
    %57 = arith.divf %55, %56 : vector<2x384xf32>
    %58 = vector.extract_strided_slice %57 {offsets = [0, 0], sizes = [2, 128], strides = [1, 1]} : vector<2x384xf32> to vector<2x128xf32>
    %59 = vector.extract_strided_slice %57 {offsets = [0, 128], sizes = [2, 128], strides = [1, 1]} : vector<2x384xf32> to vector<2x128xf32>
    %60 = vector.extract_strided_slice %57 {offsets = [0, 256], sizes = [2, 128], strides = [1, 1]} : vector<2x384xf32> to vector<2x128xf32>
    %61 = vector.extract_strided_slice %51 {offsets = [0, 384], sizes = [2, 128], strides = [1, 1]} : vector<2x512xf32> to vector<2x128xf32>
    %62 = math.tanh %61 : vector<2x128xf32>
    %63 = arith.mulf %59, %44 : vector<2x128xf32>
    %64 = arith.mulf %58, %62 : vector<2x128xf32>
    %65 = arith.addf %63, %64 : vector<2x128xf32>
    %66 = math.tanh %65 : vector<2x128xf32>
    %67 = arith.mulf %60, %66 : vector<2x128xf32>
    %c3_i32 = arith.constant 3 : i32
    %68 = arith.index_cast %c3_i32 : i32 to index
    %c0_18 = arith.constant 0 : index
    %c0_19 = arith.constant 0 : index
    %69 = vector.load %arg1[%68, %c0_18, %c0_19] : memref<8x2x512xf32, #tpu.memory_space<vmem>>, vector<1x2x512xf32>
    %70 = vector.shape_cast %69 : vector<1x2x512xf32> to vector<2x512xf32>
    %cst_20 = arith.constant dense<0.000000e+00> : vector<2x512xf32>
    %71 = tpu.matmul %67, %0, %cst_20 {dimension_numbers = #tpu.dot_dimension_numbers<[1], [0], [0], [1], [0, 0, 1, 1], [], []>} : vector<2x128xf32>, vector<128x512xf32>, vector<2x512xf32> -> vector<2x512xf32>
    %72 = arith.addf %70, %71 : vector<2x512xf32>
    %73 = vector.extract_strided_slice %72 {offsets = [0, 0], sizes = [2, 384], strides = [1, 1]} : vector<2x512xf32> to vector<2x384xf32>
    %74 = arith.negf %73 : vector<2x384xf32>
    %75 = math.exp %74 : vector<2x384xf32>
    %cst_21 = arith.constant 1.000000e+00 : f32
    %76 = vector.broadcast %cst_21 : f32 to vector<2x384xf32>
    %77 = arith.addf %76, %75 : vector<2x384xf32>
    %78 = arith.divf %76, %77 : vector<2x384xf32>
    %79 = vector.extract_strided_slice %78 {offsets = [0, 0], sizes = [2, 128], strides = [1, 1]} : vector<2x384xf32> to vector<2x128xf32>
    %80 = vector.extract_strided_slice %78 {offsets = [0, 128], sizes = [2, 128], strides = [1, 1]} : vector<2x384xf32> to vector<2x128xf32>
    %81 = vector.extract_strided_slice %78 {offsets = [0, 256], sizes = [2, 128], strides = [1, 1]} : vector<2x384xf32> to vector<2x128xf32>
    %82 = vector.extract_strided_slice %72 {offsets = [0, 384], sizes = [2, 128], strides = [1, 1]} : vector<2x512xf32> to vector<2x128xf32>
    %83 = math.tanh %82 : vector<2x128xf32>
    %84 = arith.mulf %80, %65 : vector<2x128xf32>
    %85 = arith.mulf %79, %83 : vector<2x128xf32>
    %86 = arith.addf %84, %85 : vector<2x128xf32>
    %87 = math.tanh %86 : vector<2x128xf32>
    %88 = arith.mulf %81, %87 : vector<2x128xf32>
    %c4_i32 = arith.constant 4 : i32
    %89 = arith.index_cast %c4_i32 : i32 to index
    %c0_22 = arith.constant 0 : index
    %c0_23 = arith.constant 0 : index
    %90 = vector.load %arg1[%89, %c0_22, %c0_23] : memref<8x2x512xf32, #tpu.memory_space<vmem>>, vector<1x2x512xf32>
    %91 = vector.shape_cast %90 : vector<1x2x512xf32> to vector<2x512xf32>
    %cst_24 = arith.constant dense<0.000000e+00> : vector<2x512xf32>
    %92 = tpu.matmul %88, %0, %cst_24 {dimension_numbers = #tpu.dot_dimension_numbers<[1], [0], [0], [1], [0, 0, 1, 1], [], []>} : vector<2x128xf32>, vector<128x512xf32>, vector<2x512xf32> -> vector<2x512xf32>
    %93 = arith.addf %91, %92 : vector<2x512xf32>
    %94 = vector.extract_strided_slice %93 {offsets = [0, 0], sizes = [2, 384], strides = [1, 1]} : vector<2x512xf32> to vector<2x384xf32>
    %95 = arith.negf %94 : vector<2x384xf32>
    %96 = math.exp %95 : vector<2x384xf32>
    %cst_25 = arith.constant 1.000000e+00 : f32
    %97 = vector.broadcast %cst_25 : f32 to vector<2x384xf32>
    %98 = arith.addf %97, %96 : vector<2x384xf32>
    %99 = arith.divf %97, %98 : vector<2x384xf32>
    %100 = vector.extract_strided_slice %99 {offsets = [0, 0], sizes = [2, 128], strides = [1, 1]} : vector<2x384xf32> to vector<2x128xf32>
    %101 = vector.extract_strided_slice %99 {offsets = [0, 128], sizes = [2, 128], strides = [1, 1]} : vector<2x384xf32> to vector<2x128xf32>
    %102 = vector.extract_strided_slice %99 {offsets = [0, 256], sizes = [2, 128], strides = [1, 1]} : vector<2x384xf32> to vector<2x128xf32>
    %103 = vector.extract_strided_slice %93 {offsets = [0, 384], sizes = [2, 128], strides = [1, 1]} : vector<2x512xf32> to vector<2x128xf32>
    %104 = math.tanh %103 : vector<2x128xf32>
    %105 = arith.mulf %101, %86 : vector<2x128xf32>
    %106 = arith.mulf %100, %104 : vector<2x128xf32>
    %107 = arith.addf %105, %106 : vector<2x128xf32>
    %108 = math.tanh %107 : vector<2x128xf32>
    %109 = arith.mulf %102, %108 : vector<2x128xf32>
    %c5_i32 = arith.constant 5 : i32
    %110 = arith.index_cast %c5_i32 : i32 to index
    %c0_26 = arith.constant 0 : index
    %c0_27 = arith.constant 0 : index
    %111 = vector.load %arg1[%110, %c0_26, %c0_27] : memref<8x2x512xf32, #tpu.memory_space<vmem>>, vector<1x2x512xf32>
    %112 = vector.shape_cast %111 : vector<1x2x512xf32> to vector<2x512xf32>
    %cst_28 = arith.constant dense<0.000000e+00> : vector<2x512xf32>
    %113 = tpu.matmul %109, %0, %cst_28 {dimension_numbers = #tpu.dot_dimension_numbers<[1], [0], [0], [1], [0, 0, 1, 1], [], []>} : vector<2x128xf32>, vector<128x512xf32>, vector<2x512xf32> -> vector<2x512xf32>
    %114 = arith.addf %112, %113 : vector<2x512xf32>
    %115 = vector.extract_strided_slice %114 {offsets = [0, 0], sizes = [2, 384], strides = [1, 1]} : vector<2x512xf32> to vector<2x384xf32>
    %116 = arith.negf %115 : vector<2x384xf32>
    %117 = math.exp %116 : vector<2x384xf32>
    %cst_29 = arith.constant 1.000000e+00 : f32
    %118 = vector.broadcast %cst_29 : f32 to vector<2x384xf32>
    %119 = arith.addf %118, %117 : vector<2x384xf32>
    %120 = arith.divf %118, %119 : vector<2x384xf32>
    %121 = vector.extract_strided_slice %120 {offsets = [0, 0], sizes = [2, 128], strides = [1, 1]} : vector<2x384xf32> to vector<2x128xf32>
    %122 = vector.extract_strided_slice %120 {offsets = [0, 128], sizes = [2, 128], strides = [1, 1]} : vector<2x384xf32> to vector<2x128xf32>
    %123 = vector.extract_strided_slice %120 {offsets = [0, 256], sizes = [2, 128], strides = [1, 1]} : vector<2x384xf32> to vector<2x128xf32>
    %124 = vector.extract_strided_slice %114 {offsets = [0, 384], sizes = [2, 128], strides = [1, 1]} : vector<2x512xf32> to vector<2x128xf32>
    %125 = math.tanh %124 : vector<2x128xf32>
    %126 = arith.mulf %122, %107 : vector<2x128xf32>
    %127 = arith.mulf %121, %125 : vector<2x128xf32>
    %128 = arith.addf %126, %127 : vector<2x128xf32>
    %129 = math.tanh %128 : vector<2x128xf32>
    %130 = arith.mulf %123, %129 : vector<2x128xf32>
    %c6_i32 = arith.constant 6 : i32
    %131 = arith.index_cast %c6_i32 : i32 to index
    %c0_30 = arith.constant 0 : index
    %c0_31 = arith.constant 0 : index
    %132 = vector.load %arg1[%131, %c0_30, %c0_31] : memref<8x2x512xf32, #tpu.memory_space<vmem>>, vector<1x2x512xf32>
    %133 = vector.shape_cast %132 : vector<1x2x512xf32> to vector<2x512xf32>
    %cst_32 = arith.constant dense<0.000000e+00> : vector<2x512xf32>
    %134 = tpu.matmul %130, %0, %cst_32 {dimension_numbers = #tpu.dot_dimension_numbers<[1], [0], [0], [1], [0, 0, 1, 1], [], []>} : vector<2x128xf32>, vector<128x512xf32>, vector<2x512xf32> -> vector<2x512xf32>
    %135 = arith.addf %133, %134 : vector<2x512xf32>
    %136 = vector.extract_strided_slice %135 {offsets = [0, 0], sizes = [2, 384], strides = [1, 1]} : vector<2x512xf32> to vector<2x384xf32>
    %137 = arith.negf %136 : vector<2x384xf32>
    %138 = math.exp %137 : vector<2x384xf32>
    %cst_33 = arith.constant 1.000000e+00 : f32
    %139 = vector.broadcast %cst_33 : f32 to vector<2x384xf32>
    %140 = arith.addf %139, %138 : vector<2x384xf32>
    %141 = arith.divf %139, %140 : vector<2x384xf32>
    %142 = vector.extract_strided_slice %141 {offsets = [0, 0], sizes = [2, 128], strides = [1, 1]} : vector<2x384xf32> to vector<2x128xf32>
    %143 = vector.extract_strided_slice %141 {offsets = [0, 128], sizes = [2, 128], strides = [1, 1]} : vector<2x384xf32> to vector<2x128xf32>
    %144 = vector.extract_strided_slice %141 {offsets = [0, 256], sizes = [2, 128], strides = [1, 1]} : vector<2x384xf32> to vector<2x128xf32>
    %145 = vector.extract_strided_slice %135 {offsets = [0, 384], sizes = [2, 128], strides = [1, 1]} : vector<2x512xf32> to vector<2x128xf32>
    %146 = math.tanh %145 : vector<2x128xf32>
    %147 = arith.mulf %143, %128 : vector<2x128xf32>
    %148 = arith.mulf %142, %146 : vector<2x128xf32>
    %149 = arith.addf %147, %148 : vector<2x128xf32>
    %150 = math.tanh %149 : vector<2x128xf32>
    %151 = arith.mulf %144, %150 : vector<2x128xf32>
    %c7_i32 = arith.constant 7 : i32
    %152 = arith.index_cast %c7_i32 : i32 to index
    %c0_34 = arith.constant 0 : index
    %c0_35 = arith.constant 0 : index
    %153 = vector.load %arg1[%152, %c0_34, %c0_35] : memref<8x2x512xf32, #tpu.memory_space<vmem>>, vector<1x2x512xf32>
    %154 = vector.shape_cast %153 : vector<1x2x512xf32> to vector<2x512xf32>
    %cst_36 = arith.constant dense<0.000000e+00> : vector<2x512xf32>
    %155 = tpu.matmul %151, %0, %cst_36 {dimension_numbers = #tpu.dot_dimension_numbers<[1], [0], [0], [1], [0, 0, 1, 1], [], []>} : vector<2x128xf32>, vector<128x512xf32>, vector<2x512xf32> -> vector<2x512xf32>
    %156 = arith.addf %154, %155 : vector<2x512xf32>
    %157 = vector.extract_strided_slice %156 {offsets = [0, 0], sizes = [2, 384], strides = [1, 1]} : vector<2x512xf32> to vector<2x384xf32>
    %158 = arith.negf %157 : vector<2x384xf32>
    %159 = math.exp %158 : vector<2x384xf32>
    %cst_37 = arith.constant 1.000000e+00 : f32
    %160 = vector.broadcast %cst_37 : f32 to vector<2x384xf32>
    %161 = arith.addf %160, %159 : vector<2x384xf32>
    %162 = arith.divf %160, %161 : vector<2x384xf32>
    %163 = vector.extract_strided_slice %162 {offsets = [0, 0], sizes = [2, 128], strides = [1, 1]} : vector<2x384xf32> to vector<2x128xf32>
    %164 = vector.extract_strided_slice %162 {offsets = [0, 128], sizes = [2, 128], strides = [1, 1]} : vector<2x384xf32> to vector<2x128xf32>
    %165 = vector.extract_strided_slice %162 {offsets = [0, 256], sizes = [2, 128], strides = [1, 1]} : vector<2x384xf32> to vector<2x128xf32>
    %166 = vector.extract_strided_slice %156 {offsets = [0, 384], sizes = [2, 128], strides = [1, 1]} : vector<2x512xf32> to vector<2x128xf32>
    %167 = math.tanh %166 : vector<2x128xf32>
    %168 = arith.mulf %164, %149 : vector<2x128xf32>
    %169 = arith.mulf %163, %167 : vector<2x128xf32>
    %170 = arith.addf %168, %169 : vector<2x128xf32>
    %171 = math.tanh %170 : vector<2x128xf32>
    %172 = arith.mulf %165, %171 : vector<2x128xf32>
    %c8_i32 = arith.constant 8 : i32
    %173 = vector.broadcast %1 : vector<1x128xf32> to vector<2x128xf32>
    %174 = arith.mulf %172, %173 : vector<2x128xf32>
    %cst_38 = arith.constant dense<0.000000e+00> : vector<2xf32>
    %175 = vector.multi_reduction <add>, %174, %cst_38 [1] : vector<2x128xf32> to vector<2xf32>
    %176 = vector.shape_cast %175 : vector<2xf32> to vector<2x1xf32>
    %177 = vector.broadcast %2 : vector<1x1xf32> to vector<2x1xf32>
    %178 = arith.addf %176, %177 : vector<2x1xf32>
    %c0_39 = arith.constant 0 : index
    %c0_40 = arith.constant 0 : index
    %179 = vector.load %arg5[%c0_39, %c0_40] : memref<2x1xf32, #tpu.memory_space<vmem>>, vector<2x1xf32>
    tpu.vector_store %arg5[%c0_39, %c0_40], %178 {strides = array<i32>} : memref<2x1xf32, #tpu.memory_space<vmem>>, vector<2x1xf32>,
    return
  }
  func.func @transform_0(%arg0: i32) -> (i32, i32, i32) {
    %c0_i32 = arith.constant 0 : i32
    %c0_i32_0 = arith.constant 0 : i32
    %c0_i32_1 = arith.constant 0 : i32
    %c0_i32_2 = arith.constant 0 : i32
    return %c0_i32, %c0_i32_0, %c0_i32_1 : i32, i32, i32
  }
  func.func @transform_1(%arg0: i32) -> (i32, i32) {
    %c0_i32 = arith.constant 0 : i32
    %c0_i32_0 = arith.constant 0 : i32
    %c0_i32_1 = arith.constant 0 : i32
    return %c0_i32, %c0_i32_0 : i32, i32
  }
  func.func @transform_2(%arg0: i32) -> (i32, i32) {
    %c0_i32 = arith.constant 0 : i32
    %c0_i32_0 = arith.constant 0 : i32
    %c0_i32_1 = arith.constant 0 : i32
    return %c0_i32, %c0_i32_0 : i32, i32
  }
  func.func @transform_3(%arg0: i32) -> (i32, i32) {
    %c0_i32 = arith.constant 0 : i32
    %c0_i32_0 = arith.constant 0 : i32
    %c0_i32_1 = arith.constant 0 : i32
    return %c0_i32, %c0_i32_0 : i32, i32
  }
  func.func @transform_4(%arg0: i32) -> (i32, i32) {
    %c0_i32 = arith.constant 0 : i32
    %c0_i32_0 = arith.constant 0 : i32
    %c0_i32_1 = arith.constant 0 : i32
    return %c0_i32, %c0_i32_0 : i32, i32
  }
}

</mosaic_0001>

<bundles_post_ra>
// kernel: tpu_custom_call.1
= control target key start
LH: loop header
LB: loop body
LE: loop exit
PB: predicated region body
PF: predicated region fallthrough
CT: control target
= control target key end

     0   :  { %s2718_s0 = inlined_call_operand.hbm [shape: f32[8,2,512], index: 0, kind: input, shape index: {}]   ;;  %s2719_s1 = inlined_call_operand.hbm [shape: f32[128,512], index: 1, kind: input, shape index: {}]   ;;  %s2720_s2 = inlined_call_operand.vmem [shape: f32[1,128], index: 2, kind: input, shape index: {}]   ;;  %s2721_s3 = inlined_call_operand.<no memory space> [shape: f32[1,1], index: 3, kind: input, shape index: {}]   ;;  %s2722_s4 = inlined_call_operand.vmem [shape: f32[2,1], index: 4, kind: output, shape index: {}]  }
   0x1   :  { %v9_v0 = vstv %s2721_s3 }
   0x2   :  { %10 = vst [vmem:[#allocation2] sm:$0x1] %v9_v0 }
   0x3   :  { %11 = vsyncpa [#allocation4], 0 }
   0x4   :  { %12 = vsyncpa [#allocation6], 0  ;;  %s2276_s17 = smov [#allocation3]   ;;  %s2228_s21 = scalar_lea.hbm %s2718_s0, 1024 }
   0x5   :  { %s18_s18 = sshll.u32 %s2276_s17, 4  ;;  %p2229_p0 = scmp.ne.s32.totalorder %s2718_s0, %s2228_s21  ;;  %s19_s18 = int_to_ptr.vmem [resolvable:$true] %s18_s18 }
   0x6   :  { %p2232_p1 = scmp.lt.u32.totalorder %s2228_s21, %s2718_s0 }
   0x8   :  { %p2234_p2 = pnand %p2232_p1, %p2229_p0 }
   0xa   :  { %2237 = shalt.err (!%p2234_p2)
}
   0xb   :  { %s2238_s3 = scalar_lea.vmem %s19_s18, 1024  ;;  %p2243_p4 = scmp.lt.s32.totalorder %s19_s18, %s19_s18 }
   0xc   :  { %p2239_p3 = scmp.ne.s32.totalorder %s19_s18, %s2238_s3  ;;  %p2244_p5 = scmp.lt.s32.totalorder %s2238_s3, %s2238_s3 }
   0xe   :  { %p2245_p6 = por %p2244_p5, %p2243_p4 }
  0x10   :  { %p2246_p7 = pnand %p2245_p6, %p2239_p3 }
  0x12   :  { %2249 = shalt.err (!%p2246_p7)
}
  0x13   :  { %s2277_s26 = smov 128   ;;  %s2278_s27 = smov 8  }
  0x14   :  { %24 = dma.hbm_to_vmem [thread:$0]  %s2718_s0, 1024, %s19_s18, [#allocation4], %s2277_s26, %s2277_s26, %s2278_s27  }
  0x15   :  { %s2279_s30 = smov [#allocation5]   ;;  %s2250_s8 = scalar_lea.hbm %s2719_s1, 8192 }
  0x16   :  { %s30_s5 = sshll.u32 %s2279_s30, 4  ;;  %p2251_p8 = scmp.ne.s32.totalorder %s2719_s1, %s2250_s8  ;;  %s31_s5 = int_to_ptr.vmem [resolvable:$true] %s30_s5 }
  0x17   :  { %p2254_p9 = scmp.lt.u32.totalorder %s2250_s8, %s2719_s1 }
  0x19   :  { %p2256_p10 = pnand %p2254_p9, %p2251_p8 }
  0x1b   :  { %2259 = shalt.err (!%p2256_p10)
}
  0x1c   :  { %s2260_s13 = scalar_lea.vmem %s31_s5, 8192  ;;  %p2265_p12 = scmp.lt.s32.totalorder %s31_s5, %s31_s5 }
  0x1d   :  { %p2261_p11 = scmp.ne.s32.totalorder %s31_s5, %s2260_s13  ;;  %p2266_p13 = scmp.lt.s32.totalorder %s2260_s13, %s2260_s13 }
  0x1f   :  { %p2267_p0 = por %p2266_p13, %p2265_p12 }
  0x21   :  { %p2268_p1 = pnand %p2267_p0, %p2261_p11 }
  0x23   :  { %2271 = shalt.err (!%p2268_p1)
}
  0x24   :  { %s2280_s0 = smov 512   ;;  %s2281_s14 = smov 32  }
  0x25   :  { %36 = dma.hbm_to_vmem [thread:$0]  %s2719_s1, 8192, %s31_s5, [#allocation6], %s2280_s0, %s2280_s0, %s2281_s14  }
  0x26   :  { %2272 = dma.done.wait [#allocation4], 1024  }
  0x27   :  { %2273 = vsyncadd [#allocation4], 4294966272 }
  0x28   :  { %2274 = dma.done.wait [#allocation6], 8192  }
  0x29   :  { %2275 = vsyncadd [#allocation6], 4294959104  ;;  %v2282_v1 = vmov 0.0   ;;  %v48_v2 = vld [vmem:[#allocation5 + $0x8] sm:$0xff]  ;;  %v50_v4 = vld [vmem:[#allocation5 + $0x18] sm:$0xff]  ;;  %vm1615_vm0 = vcmask 1041408  }
  0x2a   :  { %178 = vmatprep.mubr.f32.mxu0 %v2282_v1  ;;  %249 = vmatprep.mubr.f32.mxu1 %v2282_v1  ;;  %v52_v3 = vld [vmem:[#allocation5 + $0x28] sm:$0xff]  ;;  %v54_v6 = vld [vmem:[#allocation5 + $0x38] sm:$0xff]  ;;  %v47_v7 = vld [vmem:[#allocation5] sm:$0xff]  ;;  %vm1626_vm1 = vcmask 1024  }
  0x2b   :  { %v2338_v5 = vpack.c.bf16 %v52_v3, %v48_v2  ;;  %v51_v8 = vld [vmem:[#allocation5 + $0x20] sm:$0xff]  ;;  %v2340_v9 = vpack.c.bf16 %v54_v6, %v50_v4  ;;  %v49_v11 = vld [vmem:[#allocation5 + $0x10] sm:$0xff]  ;;  %v56_v13 = vld [vmem:[#allocation5 + $0x48] sm:$0xff] }
  0x2c   :  { %v2342_v10 = vpack.c.bf16 %v51_v8, %v47_v7  ;;  %v53_v12 = vld [vmem:[#allocation5 + $0x30] sm:$0xff]  ;;  %v60_v15 = vld [vmem:[#allocation5 + $0x68] sm:$0xff]  ;;  %v58_v16 = vld [vmem:[#allocation5 + $0x58] sm:$0xff] }
  0x2d   :  { %1645 = vmatprep.subr.bf16.mxu0 %v2338_v5  ;;  %v2345_v14 = vpack.c.bf16 %v53_v12, %v49_v11  ;;  %v62_v17 = vld [vmem:[#allocation5 + $0x78] sm:$0xff]  ;;  %1677 = vmatprep.subr.bf16.mxu1 %v2340_v9  ;;  %v2349_v18 = vpack.c.bf16 %v60_v15, %v56_v13  ;;  %v55_v20 = vld [vmem:[#allocation5 + $0x40] sm:$0xff]  ;;  %v57_v22 = vld [vmem:[#allocation5 + $0x50] sm:$0xff] }
  0x2e   :  { %1647 = vmatpush1.bf16.msra.mxu0 %v2342_v10  ;;  %v2351_v19 = vpack.c.bf16 %v62_v17, %v58_v16  ;;  %v59_v21 = vld [vmem:[#allocation5 + $0x60] sm:$0xff]  ;;  %v61_v24 = vld [vmem:[#allocation5 + $0x70] sm:$0xff]  ;;  %v64_v25 = vld [vmem:[#allocation5 + $0x88] sm:$0xff] }
  0x2f   :  { %1679 = vmatpush1.bf16.msra.mxu1 %v2345_v14  ;;  %v2354_v23 = vpack.c.bf16 %v59_v21, %v55_v20  ;;  %v68_v26 = vld [vmem:[#allocation5 + $0xa8] sm:$0xff]  ;;  %1649 = vmatprep.subr.bf16.mxu0 %v2349_v18  ;;  %v2358_v27 = vpack.c.bf16 %v61_v24, %v57_v22  ;;  %v66_v29 = vld [vmem:[#allocation5 + $0x98] sm:$0xff]  ;;  %v63_v31 = vld [vmem:[#allocation5 + $0x80] sm:$0xff] }
  0x30   :  { %1681 = vmatprep.subr.bf16.mxu1 %v2351_v19  ;;  %v2360_v28 = vpack.c.bf16 %v68_v26, %v64_v25  ;;  %v70_v30 = vld [vmem:[#allocation5 + $0xb8] sm:$0xff]  ;;  %v67_v33 = vld [vmem:[#allocation5 + $0xa0] sm:$0xff]  ;;  %v65_v34 = vld [vmem:[#allocation5 + $0x90] sm:$0xff] }
  0x31   :  { %v2362_v32 = vpack.c.bf16 %v70_v30, %v66_v29  ;;  %v69_v35 = vld [vmem:[#allocation5 + $0xb0] sm:$0xff]  ;;  %v2365_v36 = vpack.c.bf16 %v67_v33, %v63_v31  ;;  %v72_v37 = vld [vmem:[#allocation5 + $0xc8] sm:$0xff]  ;;  %v74_v39 = vld [vmem:[#allocation5 + $0xd8] sm:$0xff] }
  0x32   :  { %1651 = vmatpush1.bf16.msra.mxu0 %v2354_v23  ;;  %v76_v38 = vld [vmem:[#allocation5 + $0xe8] sm:$0xff]  ;;  %v2369_v40 = vpack.c.bf16 %v69_v35, %v65_v34  ;;  %v78_v42 = vld [vmem:[#allocation5 + $0xf8] sm:$0xff]  ;;  %v71_v43 = vld [vmem:[#allocation5 + $0xc0] sm:$0xff] }
  0x33   :  { %1683 = vmatpush1.bf16.msra.mxu1 %v2358_v27  ;;  %1653 = vmatprep.subr.bf16.mxu0 %v2360_v28  ;;  %v2371_v41 = vpack.c.bf16 %v76_v38, %v72_v37  ;;  %v75_v44 = vld [vmem:[#allocation5 + $0xe0] sm:$0xff]  ;;  %v2374_v45 = vpack.c.bf16 %v78_v42, %v74_v39  ;;  %v73_v46 = vld [vmem:[#allocation5 + $0xd0] sm:$0xff]  ;;  %v80_v48 = vld [vmem:[#allocation5 + $0x108] sm:$0xff] }
  0x34   :  { %1685 = vmatprep.subr.bf16.mxu1 %v2362_v32  ;;  %v77_v47 = vld [vmem:[#allocation5 + $0xf0] sm:$0xff]  ;;  %v84_v49 = vld [vmem:[#allocation5 + $0x128] sm:$0xff]  ;;  %v82_v50 = vld [vmem:[#allocation5 + $0x118] sm:$0xff]  ;;  %v2377_v52 = vpack.c.bf16 %v75_v44, %v71_v43 }
  0x35   :  { %v86_v51 = vld [vmem:[#allocation5 + $0x138] sm:$0xff]  ;;  %v2381_v53 = vpack.c.bf16 %v77_v47, %v73_v46  ;;  %v2383_v54 = vpack.c.bf16 %v84_v49, %v80_v48  ;;  %v79_v55 = vld [vmem:[#allocation5 + $0x100] sm:$0xff]  ;;  %v81_v57 = vld [vmem:[#allocation5 + $0x110] sm:$0xff]  ;;  %v2283_v49 = vmov 1983009808  }
  0x36   :  { %1655 = vmatpush1.bf16.msra.mxu0 %v2365_v36  ;;  %v83_v56 = vld [vmem:[#allocation5 + $0x120] sm:$0xff]  ;;  %v2386_v58 = vpack.c.bf16 %v86_v51, %v82_v50  ;;  %v85_v59 = vld [vmem:[#allocation5 + $0x130] sm:$0xff]  ;;  %v88_v60 = vld [vmem:[#allocation5 + $0x148] sm:$0xff]  ;;  %v263_v50 = vunpack.c.l.s4 %v2283_v49  ;;  %v265_v51 = vlaneseq }
  0x37   :  { %1687 = vmatpush1.bf16.msra.mxu1 %v2369_v40  ;;  %1657 = vmatprep.subr.bf16.mxu0 %v2371_v41  ;;  %v92_v61 = vld [vmem:[#allocation5 + $0x168] sm:$0xff]  ;;  %v90_v62 = vld [vmem:[#allocation5 + $0x158] sm:$0xff]  ;;  %v2389_v0 = vpack.c.bf16 %v83_v56, %v79_v55  ;;  %v2393_v2 = vpack.c.bf16 %v85_v59, %v81_v57  ;;  %v87_v4 = vld [vmem:[#allocation5 + $0x140] sm:$0xff] }
  0x38   :  { %1689 = vmatprep.subr.bf16.mxu1 %v2374_v45  ;;  %v94_v63 = vld [vmem:[#allocation5 + $0x178] sm:$0xff]  ;;  %v2395_v3 = vpack.c.bf16 %v92_v61, %v88_v60  ;;  %v91_v6 = vld [vmem:[#allocation5 + $0x160] sm:$0xff]  ;;  %v89_v7 = vld [vmem:[#allocation5 + $0x150] sm:$0xff]  ;;  %v264_v55 = vunpack.c.0.s8 %v263_v50  ;;  %v266_v56 = vshrl.u32 %v265_v51, 7 }
  0x39   :  { %v2398_v8 = vpack.c.bf16 %v94_v63, %v90_v62  ;;  %v93_v11 = vld [vmem:[#allocation5 + $0x170] sm:$0xff]  ;;  %v96_v12 = vld [vmem:[#allocation5 + $0x188] sm:$0xff]  ;;  %v98_v15 = vld [vmem:[#allocation5 + $0x198] sm:$0xff]  ;;  %v2401_v17 = vpack.c.bf16 %v91_v6, %v87_v4 }
  0x3a   :  { %1659 = vmatpush1.bf16.msra.mxu0 %v2377_v52  ;;  %v100_v13 = vld [vmem:[#allocation5 + $0x1a8] sm:$0xff]  ;;  %v102_v16 = vld [vmem:[#allocation5 + $0x1b8] sm:$0xff]  ;;  %v2405_v20 = vpack.c.bf16 %v93_v11, %v89_v7  ;;  %v95_v22 = vld [vmem:[#allocation5 + $0x180] sm:$0xff]  ;;  %v2472_v59 = vsub.s32 %v264_v55, %v266_v56 }
  0x3b   :  { %1691 = vmatpush1.bf16.msra.mxu1 %v2381_v53  ;;  %1661 = vmatprep.subr.bf16.mxu0 %v2383_v54  ;;  %v2407_v21 = vpack.c.bf16 %v100_v13, %v96_v12  ;;  %v99_v24 = vld [vmem:[#allocation5 + $0x1a0] sm:$0xff]  ;;  %v97_v25 = vld [vmem:[#allocation5 + $0x190] sm:$0xff]  ;;  %v2410_v26 = vpack.c.bf16 %v102_v16, %v98_v15  ;;  %v104_v30 = vld [vmem:[#allocation5 + $0x1c8] sm:$0xff] }
  0x3c   :  { %1693 = vmatprep.subr.bf16.mxu1 %v2386_v58  ;;  %v101_v29 = vld [vmem:[#allocation5 + $0x1b0] sm:$0xff]  ;;  %v108_v31 = vld [vmem:[#allocation5 + $0x1e8] sm:$0xff]  ;;  %v106_v33 = vld [vmem:[#allocation5 + $0x1d8] sm:$0xff]  ;;  %v2413_v35 = vpack.c.bf16 %v99_v24, %v95_v22 }
  0x3d   :  { %v110_v34 = vld [vmem:[#allocation5 + $0x1f8] sm:$0xff]  ;;  %v2417_v37 = vpack.c.bf16 %v101_v29, %v97_v25  ;;  %v2419_v38 = vpack.c.bf16 %v108_v31, %v104_v30  ;;  %v103_v39 = vld [vmem:[#allocation5 + $0x1c0] sm:$0xff]  ;;  %v105_v44 = vld [vmem:[#allocation5 + $0x1d0] sm:$0xff] }
  0x3e   :  { %1663 = vmatpush1.bf16.msra.mxu0 %v2389_v0  ;;  %v107_v42 = vld [vmem:[#allocation5 + $0x1e0] sm:$0xff]  ;;  %v2422_v43 = vpack.c.bf16 %v110_v34, %v106_v33  ;;  %v109_v46 = vld [vmem:[#allocation5 + $0x1f0] sm:$0xff] }
  0x3f   :  { %1695 = vmatpush1.bf16.msra.mxu1 %v2393_v2  ;;  %1665 = vmatprep.subr.bf16.mxu0 %v2395_v3  ;;  %v2425_v47 = vpack.c.bf16 %v107_v42, %v103_v39  ;;  %v2429_v48 = vpack.c.bf16 %v109_v46, %v105_v44  ;;  %v113_v11 = vld [vmem:[#allocation3] sm:$0xff] }
  0x40   :  { %1697 = vmatprep.subr.bf16.mxu1 %v2398_v8 }
  0x42   :  { %1667 = vmatpush1.bf16.msra.mxu0 %v2401_v17 }
  0x43   :  { %1699 = vmatpush1.bf16.msra.mxu1 %v2405_v20  ;;  %1669 = vmatprep.subr.bf16.mxu0 %v2407_v21 }
  0x44   :  { %1701 = vmatprep.subr.bf16.mxu1 %v2410_v26 }
  0x46   :  { %1671 = vmatpush1.bf16.msra.mxu0 %v2413_v35 }
  0x47   :  { %1703 = vmatpush1.bf16.msra.mxu1 %v2417_v37  ;;  %1673 = vmatprep.subr.bf16.mxu0 %v2419_v38 }
  0x48   :  { %1705 = vmatprep.subr.bf16.mxu1 %v2422_v43 }
  0x4a   :  { %1675 = vmatpush1.bf16.msra.mxu0 %v2425_v47 }
  0x4b   :  { %1707 = vmatpush1.bf16.msra.mxu1 %v2429_v48  ;;  %1709 = vmatprep.subr.bf16.mxu0 %v2338_v5 }
  0x4c   :  { %1741 = vmatprep.subr.bf16.mxu1 %v2340_v9 }
  0x4d   :  { %179 = vmatmul.mubr.f32.vlgmr.msra.gmra.mrb[0].mxu0 %v2282_v1 }
  0x4e   :  { %250 = vmatmul.mubr.f32.vlgmr.msra.gmra.mrb[0].mxu1 %v2282_v1  ;;  %1711 = vmatpush1.bf16.msra.mxu0 %v2342_v10 }
  0x4f   :  { %1743 = vmatpush1.bf16.msra.mxu1 %v2345_v14  ;;  %1713 = vmatprep.subr.bf16.mxu0 %v2349_v18 }
  0x50   :  { %1745 = vmatprep.subr.bf16.mxu1 %v2351_v19  ;;  %365 = vmatprep.mubr.f32.mxu0 %v2282_v1 }
  0x51   :  { %436 = vmatprep.mubr.f32.mxu1 %v2282_v1 }
  0x52   :  { %1715 = vmatpush1.bf16.msra.mxu0 %v2354_v23 }
  0x53   :  { %1747 = vmatpush1.bf16.msra.mxu1 %v2358_v27  ;;  %1717 = vmatprep.subr.bf16.mxu0 %v2360_v28 }
  0x54   :  { %1749 = vmatprep.subr.bf16.mxu1 %v2362_v32 }
  0x56   :  { %1719 = vmatpush1.bf16.msra.mxu0 %v2365_v36 }
  0x57   :  { %1751 = vmatpush1.bf16.msra.mxu1 %v2369_v40  ;;  %1721 = vmatprep.subr.bf16.mxu0 %v2371_v41 }
  0x58   :  { %1753 = vmatprep.subr.bf16.mxu1 %v2374_v45 }
  0x5a   :  { %1723 = vmatpush1.bf16.msra.mxu0 %v2377_v52 }
  0x5b   :  { %1755 = vmatpush1.bf16.msra.mxu1 %v2381_v53  ;;  %1725 = vmatprep.subr.bf16.mxu0 %v2383_v54 }
  0x5c   :  { %1757 = vmatprep.subr.bf16.mxu1 %v2386_v58 }
  0x5e   :  { %1727 = vmatpush1.bf16.msra.mxu0 %v2389_v0 }
  0x5f   :  { %1759 = vmatpush1.bf16.msra.mxu1 %v2393_v2  ;;  %1729 = vmatprep.subr.bf16.mxu0 %v2395_v3 }
  0x60   :  { %1761 = vmatprep.subr.bf16.mxu1 %v2398_v8 }
  0x62   :  { %1731 = vmatpush1.bf16.msra.mxu0 %v2401_v17 }
  0x63   :  { %1763 = vmatpush1.bf16.msra.mxu1 %v2405_v20  ;;  %1733 = vmatprep.subr.bf16.mxu0 %v2407_v21 }
  0x64   :  { %1765 = vmatprep.subr.bf16.mxu1 %v2410_v26 }
  0x66   :  { %1735 = vmatpush1.bf16.msra.mxu0 %v2413_v35 }
  0x67   :  { %1767 = vmatpush1.bf16.msra.mxu1 %v2417_v37  ;;  %1737 = vmatprep.subr.bf16.mxu0 %v2419_v38 }
  0x68   :  { %1769 = vmatprep.subr.bf16.mxu1 %v2422_v43 }
  0x6a   :  { %1739 = vmatpush1.bf16.msra.mxu0 %v2425_v47 }
  0x6b   :  { %1771 = vmatpush1.bf16.msra.mxu1 %v2429_v48  ;;  %1773 = vmatprep.subr.bf16.mxu0 %v2338_v5 }
  0x6c   :  { %1805 = vmatprep.subr.bf16.mxu1 %v2340_v9 }
 0x120   :  { %v180_v57 = vpop.f32.mrb[0].mxu0 }
 0x121   :  { %v251_v60 = vpop.f32.mrb[0].mxu1  ;;  %v182_v61 = vpop.f32.mrb[1].mxu0 }
 0x122   :  { %v260_v62 = vcombine.low %v180_v57, %v182_v61  ;;  %v253_v63 = vpop.f32.mrb[1].mxu1  ;;  %v300_v61 = vld [vmem:[#allocation3 + $0x8] sm:$0xff] }
 0x123   :  { %v261_v4 = vcombine.low %v251_v60, %v253_v63 }
 0x124   :  { %v268_v6 = vrot.slane %v260_v62, %v2472_v59 }
 0x125   :  { %v275_v7 = vrot.slane %v261_v4, %v2472_v59 }
 0x127   :  { %v276_v12 = vcombine.low %v268_v6, %v275_v7 }
 0x129   :  { %v278_v13 = vadd.f32 %v276_v12, %v113_v11 }
 0x12b   :  { %v1634_v15 = vmul.f32 -1.442695, %v278_v13  ;;  %v286_v24 = vrot.slane %v278_v13, 6 }
 0x12d   :  { %2164 = vpow2.f32 %v1634_v15 }
 0x137   :  { %v2165_v16 = vpop.eup %2164 }
 0x138   :  { %v282_v22 = vadd.f32 1.0, %v2165_v16 }
 0x13a   :  { %2166 = vrcp.f32 %v282_v22 }
 0x13b   :  { %2168 = vtanh.f32 %v286_v24 }
 0x144   :  { %v2167_v25 = vpop.eup %2166 }
 0x145   :  { %v290_v29 = vrot.slane %v2167_v25, 2  ;;  %v2169_v30 = vpop.eup %2168  ;;  %v296_v39 = vrot.slane %v2167_v25, 4 }
 0x146   :  { %v293_v31 = vmul.f32 %v2169_v30, %v2167_v25 }
 0x147   :  { %v292_v33 = vmul.f32 0.0, %v290_v29 }
 0x149   :  { %v2476_v34 = vadd.f32 %v293_v31, %v292_v33 }
 0x14b   :  { %2170 = vtanh.f32 %v2476_v34 }
 0x155   :  { %v2171_v42 = vpop.eup %2170 }
 0x156   :  { %v298_v44 = vmul.f32 %v2171_v42, %v296_v39 }
 0x158   :  { %366 = vmatmul.mubr.f32.vlgmr.msra.gmra.mrb[2].mxu0 %v298_v44  ;;  %437 = vmatmul.mubr.f32.vlgmr.msra.gmra.mrb[2].mxu1 %v298_v44 }
 0x159   :  { %1775 = vmatpush1.bf16.msra.mxu0 %v2342_v10  ;;  %1807 = vmatpush1.bf16.msra.mxu1 %v2345_v14 }
 0x15a   :  { %1777 = vmatprep.subr.bf16.mxu0 %v2349_v18  ;;  %1809 = vmatprep.subr.bf16.mxu1 %v2351_v19 }
 0x15b   :  { %552 = vmatprep.mubr.f32.mxu0 %v2282_v1  ;;  %623 = vmatprep.mubr.f32.mxu1 %v2282_v1 }
 0x15d   :  { %1779 = vmatpush1.bf16.msra.mxu0 %v2354_v23  ;;  %1811 = vmatpush1.bf16.msra.mxu1 %v2358_v27 }
 0x15e   :  { %1781 = vmatprep.subr.bf16.mxu0 %v2360_v28  ;;  %1813 = vmatprep.subr.bf16.mxu1 %v2362_v32 }
 0x161   :  { %1783 = vmatpush1.bf16.msra.mxu0 %v2365_v36  ;;  %1815 = vmatpush1.bf16.msra.mxu1 %v2369_v40 }
 0x162   :  { %1785 = vmatprep.subr.bf16.mxu0 %v2371_v41  ;;  %1817 = vmatprep.subr.bf16.mxu1 %v2374_v45 }
 0x165   :  { %1787 = vmatpush1.bf16.msra.mxu0 %v2377_v52  ;;  %1819 = vmatpush1.bf16.msra.mxu1 %v2381_v53 }
 0x166   :  { %1789 = vmatprep.subr.bf16.mxu0 %v2383_v54  ;;  %1821 = vmatprep.subr.bf16.mxu1 %v2386_v58 }
 0x169   :  { %1791 = vmatpush1.bf16.msra.mxu0 %v2389_v0  ;;  %1823 = vmatpush1.bf16.msra.mxu1 %v2393_v2 }
 0x16a   :  { %1793 = vmatprep.subr.bf16.mxu0 %v2395_v3  ;;  %1825 = vmatprep.subr.bf16.mxu1 %v2398_v8 }
 0x16d   :  { %1795 = vmatpush1.bf16.msra.mxu0 %v2401_v17  ;;  %1827 = vmatpush1.bf16.msra.mxu1 %v2405_v20 }
 0x16e   :  { %1797 = vmatprep.subr.bf16.mxu0 %v2407_v21  ;;  %1829 = vmatprep.subr.bf16.mxu1 %v2410_v26 }
 0x171   :  { %1799 = vmatpush1.bf16.msra.mxu0 %v2413_v35  ;;  %1831 = vmatpush1.bf16.msra.mxu1 %v2417_v37 }
 0x172   :  { %1801 = vmatprep.subr.bf16.mxu0 %v2419_v38  ;;  %1833 = vmatprep.subr.bf16.mxu1 %v2422_v43 }
 0x175   :  { %1803 = vmatpush1.bf16.msra.mxu0 %v2425_v47  ;;  %1835 = vmatpush1.bf16.msra.mxu1 %v2429_v48 }
 0x176   :  { %1837 = vmatprep.subr.bf16.mxu0 %v2338_v5  ;;  %1869 = vmatprep.subr.bf16.mxu1 %v2340_v9 }
 0x22b   :  { %v367_v46 = vpop.f32.mrb[2].mxu0  ;;  %v438_v49 = vpop.f32.mrb[2].mxu1 }
 0x22c   :  { %v369_v50 = vpop.f32.mrb[3].mxu0  ;;  %v440_v51 = vpop.f32.mrb[3].mxu1 }
 0x22d   :  { %v447_v55 = vcombine.low %v367_v46, %v369_v50  ;;  %v448_v56 = vcombine.low %v438_v49, %v440_v51  ;;  %v487_v50 = vld [vmem:[#allocation3 + $0x10] sm:$0xff] }
 0x22f   :  { %v455_v57 = vrot.slane %v447_v55, %v2472_v59  ;;  %v462_v60 = vrot.slane %v448_v56, %v2472_v59 }
 0x231   :  { %v463_v62 = vcombine.low %v455_v57, %v462_v60 }
 0x233   :  { %v465_v63 = vadd.f32 %v463_v62, %v300_v61 }
 0x235   :  { %v1635_v4 = vmul.f32 -1.442695, %v465_v63  ;;  %v473_v11 = vrot.slane %v465_v63, 6 }
 0x237   :  { %2172 = vpow2.f32 %v1635_v4 }
 0x241   :  { %v2173_v6 = vpop.eup %2172 }
 0x242   :  { %v469_v7 = vadd.f32 1.0, %v2173_v6 }
 0x244   :  { %2174 = vrcp.f32 %v469_v7 }
 0x245   :  { %2176 = vtanh.f32 %v473_v11 }
 0x24e   :  { %v2175_v12 = vpop.eup %2174 }
 0x24f   :  { %v477_v13 = vrot.slane %v2175_v12, 2  ;;  %v2177_v15 = vpop.eup %2176  ;;  %v483_v25 = vrot.slane %v2175_v12, 4 }
 0x250   :  { %v480_v16 = vmul.f32 %v2177_v15, %v2175_v12 }
 0x251   :  { %v479_v22 = vmul.f32 %v477_v13, %v2476_v34 }
 0x253   :  { %v2516_v24 = vadd.f32 %v480_v16, %v479_v22 }
 0x255   :  { %2178 = vtanh.f32 %v2516_v24 }
 0x25f   :  { %v2179_v29 = vpop.eup %2178 }
 0x260   :  { %v485_v30 = vmul.f32 %v2179_v29, %v483_v25 }
 0x262   :  { %553 = vmatmul.mubr.f32.vlgmr.msra.gmra.mrb[4].mxu0 %v485_v30  ;;  %624 = vmatmul.mubr.f32.vlgmr.msra.gmra.mrb[4].mxu1 %v485_v30 }
 0x263   :  { %1839 = vmatpush1.bf16.msra.mxu0 %v2342_v10  ;;  %1871 = vmatpush1.bf16.msra.mxu1 %v2345_v14 }
 0x264   :  { %1841 = vmatprep.subr.bf16.mxu0 %v2349_v18  ;;  %1873 = vmatprep.subr.bf16.mxu1 %v2351_v19 }
 0x265   :  { %739 = vmatprep.mubr.f32.mxu0 %v2282_v1  ;;  %810 = vmatprep.mubr.f32.mxu1 %v2282_v1 }
 0x267   :  { %1843 = vmatpush1.bf16.msra.mxu0 %v2354_v23  ;;  %1875 = vmatpush1.bf16.msra.mxu1 %v2358_v27 }
 0x268   :  { %1845 = vmatprep.subr.bf16.mxu0 %v2360_v28  ;;  %1877 = vmatprep.subr.bf16.mxu1 %v2362_v32 }
 0x26b   :  { %1847 = vmatpush1.bf16.msra.mxu0 %v2365_v36  ;;  %1879 = vmatpush1.bf16.msra.mxu1 %v2369_v40 }
 0x26c   :  { %1849 = vmatprep.subr.bf16.mxu0 %v2371_v41  ;;  %1881 = vmatprep.subr.bf16.mxu1 %v2374_v45 }
 0x26f   :  { %1851 = vmatpush1.bf16.msra.mxu0 %v2377_v52  ;;  %1883 = vmatpush1.bf16.msra.mxu1 %v2381_v53 }
 0x270   :  { %1853 = vmatprep.subr.bf16.mxu0 %v2383_v54  ;;  %1885 = vmatprep.subr.bf16.mxu1 %v2386_v58 }
 0x273   :  { %1855 = vmatpush1.bf16.msra.mxu0 %v2389_v0  ;;  %1887 = vmatpush1.bf16.msra.mxu1 %v2393_v2 }
 0x274   :  { %1857 = vmatprep.subr.bf16.mxu0 %v2395_v3  ;;  %1889 = vmatprep.subr.bf16.mxu1 %v2398_v8 }
 0x277   :  { %1859 = vmatpush1.bf16.msra.mxu0 %v2401_v17  ;;  %1891 = vmatpush1.bf16.msra.mxu1 %v2405_v20 }
 0x278   :  { %1861 = vmatprep.subr.bf16.mxu0 %v2407_v21  ;;  %1893 = vmatprep.subr.bf16.mxu1 %v2410_v26 }
 0x27b   :  { %1863 = vmatpush1.bf16.msra.mxu0 %v2413_v35  ;;  %1895 = vmatpush1.bf16.msra.mxu1 %v2417_v37 }
 0x27c   :  { %1865 = vmatprep.subr.bf16.mxu0 %v2419_v38  ;;  %1897 = vmatprep.subr.bf16.mxu1 %v2422_v43 }
 0x27f   :  { %1867 = vmatpush1.bf16.msra.mxu0 %v2425_v47  ;;  %1899 = vmatpush1.bf16.msra.mxu1 %v2429_v48 }
 0x280   :  { %1901 = vmatprep.subr.bf16.mxu0 %v2338_v5  ;;  %1933 = vmatprep.subr.bf16.mxu1 %v2340_v9 }
 0x335   :  { %v554_v31 = vpop.f32.mrb[4].mxu0  ;;  %v625_v33 = vpop.f32.mrb[4].mxu1 }
 0x336   :  { %v556_v34 = vpop.f32.mrb[5].mxu0  ;;  %v627_v39 = vpop.f32.mrb[5].mxu1 }
 0x337   :  { %v634_v42 = vcombine.low %v554_v31, %v556_v34  ;;  %v635_v44 = vcombine.low %v625_v33, %v627_v39  ;;  %v674_v34 = vld [vmem:[#allocation3 + $0x18] sm:$0xff] }
 0x339   :  { %v642_v46 = vrot.slane %v634_v42, %v2472_v59  ;;  %v649_v49 = vrot.slane %v635_v44, %v2472_v59 }
 0x33b   :  { %v650_v51 = vcombine.low %v642_v46, %v649_v49 }
 0x33d   :  { %v652_v55 = vadd.f32 %v650_v51, %v487_v50 }
 0x33f   :  { %v1636_v56 = vmul.f32 -1.442695, %v652_v55  ;;  %v660_v61 = vrot.slane %v652_v55, 6 }
 0x341   :  { %2180 = vpow2.f32 %v1636_v56 }
 0x34b   :  { %v2181_v57 = vpop.eup %2180 }
 0x34c   :  { %v656_v60 = vadd.f32 1.0, %v2181_v57 }
 0x34e   :  { %2182 = vrcp.f32 %v656_v60 }
 0x34f   :  { %2184 = vtanh.f32 %v660_v61 }
 0x358   :  { %v2183_v62 = vpop.eup %2182 }
 0x359   :  { %v664_v63 = vrot.slane %v2183_v62, 2  ;;  %v2185_v4 = vpop.eup %2184  ;;  %v670_v12 = vrot.slane %v2183_v62, 4 }
 0x35a   :  { %v667_v6 = vmul.f32 %v2185_v4, %v2183_v62 }
 0x35b   :  { %v666_v7 = vmul.f32 %v664_v63, %v2516_v24 }
 0x35d   :  { %v2556_v11 = vadd.f32 %v667_v6, %v666_v7 }
 0x35f   :  { %2186 = vtanh.f32 %v2556_v11 }
 0x369   :  { %v2187_v13 = vpop.eup %2186 }
 0x36a   :  { %v672_v15 = vmul.f32 %v2187_v13, %v670_v12 }
 0x36c   :  { %740 = vmatmul.mubr.f32.vlgmr.msra.gmra.mrb[6].mxu0 %v672_v15  ;;  %811 = vmatmul.mubr.f32.vlgmr.msra.gmra.mrb[6].mxu1 %v672_v15 }
 0x36d   :  { %1903 = vmatpush1.bf16.msra.mxu0 %v2342_v10  ;;  %1935 = vmatpush1.bf16.msra.mxu1 %v2345_v14 }
 0x36e   :  { %1905 = vmatprep.subr.bf16.mxu0 %v2349_v18  ;;  %1937 = vmatprep.subr.bf16.mxu1 %v2351_v19 }
 0x36f   :  { %926 = vmatprep.mubr.f32.mxu0 %v2282_v1  ;;  %997 = vmatprep.mubr.f32.mxu1 %v2282_v1 }
 0x371   :  { %1907 = vmatpush1.bf16.msra.mxu0 %v2354_v23  ;;  %1939 = vmatpush1.bf16.msra.mxu1 %v2358_v27 }
 0x372   :  { %1909 = vmatprep.subr.bf16.mxu0 %v2360_v28  ;;  %1941 = vmatprep.subr.bf16.mxu1 %v2362_v32 }
 0x375   :  { %1911 = vmatpush1.bf16.msra.mxu0 %v2365_v36  ;;  %1943 = vmatpush1.bf16.msra.mxu1 %v2369_v40 }
 0x376   :  { %1913 = vmatprep.subr.bf16.mxu0 %v2371_v41  ;;  %1945 = vmatprep.subr.bf16.mxu1 %v2374_v45 }
 0x379   :  { %1915 = vmatpush1.bf16.msra.mxu0 %v2377_v52  ;;  %1947 = vmatpush1.bf16.msra.mxu1 %v2381_v53 }
 0x37a   :  { %1917 = vmatprep.subr.bf16.mxu0 %v2383_v54  ;;  %1949 = vmatprep.subr.bf16.mxu1 %v2386_v58 }
 0x37d   :  { %1919 = vmatpush1.bf16.msra.mxu0 %v2389_v0  ;;  %1951 = vmatpush1.bf16.msra.mxu1 %v2393_v2 }
 0x37e   :  { %1921 = vmatprep.subr.bf16.mxu0 %v2395_v3  ;;  %1953 = vmatprep.subr.bf16.mxu1 %v2398_v8 }
 0x381   :  { %1923 = vmatpush1.bf16.msra.mxu0 %v2401_v17  ;;  %1955 = vmatpush1.bf16.msra.mxu1 %v2405_v20 }
 0x382   :  { %1925 = vmatprep.subr.bf16.mxu0 %v2407_v21  ;;  %1957 = vmatprep.subr.bf16.mxu1 %v2410_v26 }
 0x385   :  { %1927 = vmatpush1.bf16.msra.mxu0 %v2413_v35  ;;  %1959 = vmatpush1.bf16.msra.mxu1 %v2417_v37 }
 0x386   :  { %1929 = vmatprep.subr.bf16.mxu0 %v2419_v38  ;;  %1961 = vmatprep.subr.bf16.mxu1 %v2422_v43 }
 0x389   :  { %1931 = vmatpush1.bf16.msra.mxu0 %v2425_v47  ;;  %1963 = vmatpush1.bf16.msra.mxu1 %v2429_v48 }
 0x38a   :  { %1965 = vmatprep.subr.bf16.mxu0 %v2338_v5  ;;  %1997 = vmatprep.subr.bf16.mxu1 %v2340_v9 }
 0x43f   :  { %v741_v16 = vpop.f32.mrb[6].mxu0  ;;  %v812_v22 = vpop.f32.mrb[6].mxu1 }
 0x440   :  { %v743_v24 = vpop.f32.mrb[7].mxu0  ;;  %v814_v25 = vpop.f32.mrb[7].mxu1 }
 0x441   :  { %v821_v29 = vcombine.low %v741_v16, %v743_v24  ;;  %v822_v30 = vcombine.low %v812_v22, %v814_v25  ;;  %v861_v24 = vld [vmem:[#allocation3 + $0x20] sm:$0xff] }
 0x443   :  { %v829_v31 = vrot.slane %v821_v29, %v2472_v59  ;;  %v836_v33 = vrot.slane %v822_v30, %v2472_v59 }
 0x445   :  { %v837_v39 = vcombine.low %v829_v31, %v836_v33 }
 0x447   :  { %v839_v42 = vadd.f32 %v837_v39, %v674_v34 }
 0x449   :  { %v1637_v44 = vmul.f32 -1.442695, %v839_v42  ;;  %v847_v50 = vrot.slane %v839_v42, 6 }
 0x44b   :  { %2188 = vpow2.f32 %v1637_v44 }
 0x455   :  { %v2189_v46 = vpop.eup %2188 }
 0x456   :  { %v843_v49 = vadd.f32 1.0, %v2189_v46 }
 0x458   :  { %2190 = vrcp.f32 %v843_v49 }
 0x459   :  { %2192 = vtanh.f32 %v847_v50 }
 0x462   :  { %v2191_v51 = vpop.eup %2190 }
 0x463   :  { %v851_v55 = vrot.slane %v2191_v51, 2  ;;  %v2193_v56 = vpop.eup %2192  ;;  %v857_v62 = vrot.slane %v2191_v51, 4 }
 0x464   :  { %v854_v57 = vmul.f32 %v2193_v56, %v2191_v51 }
 0x465   :  { %v853_v60 = vmul.f32 %v851_v55, %v2556_v11 }
 0x467   :  { %v2596_v61 = vadd.f32 %v854_v57, %v853_v60 }
 0x469   :  { %2194 = vtanh.f32 %v2596_v61 }
 0x473   :  { %v2195_v63 = vpop.eup %2194 }
 0x474   :  { %v859_v4 = vmul.f32 %v2195_v63, %v857_v62 }
 0x476   :  { %927 = vmatmul.mubr.f32.vlgmr.msra.gmra.mrb[8].mxu0 %v859_v4  ;;  %998 = vmatmul.mubr.f32.vlgmr.msra.gmra.mrb[8].mxu1 %v859_v4 }
 0x477   :  { %1967 = vmatpush1.bf16.msra.mxu0 %v2342_v10  ;;  %1999 = vmatpush1.bf16.msra.mxu1 %v2345_v14 }
 0x478   :  { %1969 = vmatprep.subr.bf16.mxu0 %v2349_v18  ;;  %2001 = vmatprep.subr.bf16.mxu1 %v2351_v19 }
 0x479   :  { %1113 = vmatprep.mubr.f32.mxu0 %v2282_v1  ;;  %1184 = vmatprep.mubr.f32.mxu1 %v2282_v1 }
 0x47b   :  { %1971 = vmatpush1.bf16.msra.mxu0 %v2354_v23  ;;  %2003 = vmatpush1.bf16.msra.mxu1 %v2358_v27 }
 0x47c   :  { %1973 = vmatprep.subr.bf16.mxu0 %v2360_v28  ;;  %2005 = vmatprep.subr.bf16.mxu1 %v2362_v32 }
 0x47f   :  { %1975 = vmatpush1.bf16.msra.mxu0 %v2365_v36  ;;  %2007 = vmatpush1.bf16.msra.mxu1 %v2369_v40 }
 0x480   :  { %1977 = vmatprep.subr.bf16.mxu0 %v2371_v41  ;;  %2009 = vmatprep.subr.bf16.mxu1 %v2374_v45 }
 0x483   :  { %1979 = vmatpush1.bf16.msra.mxu0 %v2377_v52  ;;  %2011 = vmatpush1.bf16.msra.mxu1 %v2381_v53 }
 0x484   :  { %1981 = vmatprep.subr.bf16.mxu0 %v2383_v54  ;;  %2013 = vmatprep.subr.bf16.mxu1 %v2386_v58 }
 0x487   :  { %1983 = vmatpush1.bf16.msra.mxu0 %v2389_v0  ;;  %2015 = vmatpush1.bf16.msra.mxu1 %v2393_v2 }
 0x488   :  { %1985 = vmatprep.subr.bf16.mxu0 %v2395_v3  ;;  %2017 = vmatprep.subr.bf16.mxu1 %v2398_v8 }
 0x48b   :  { %1987 = vmatpush1.bf16.msra.mxu0 %v2401_v17  ;;  %2019 = vmatpush1.bf16.msra.mxu1 %v2405_v20 }
 0x48c   :  { %1989 = vmatprep.subr.bf16.mxu0 %v2407_v21  ;;  %2021 = vmatprep.subr.bf16.mxu1 %v2410_v26 }
 0x48f   :  { %1991 = vmatpush1.bf16.msra.mxu0 %v2413_v35  ;;  %2023 = vmatpush1.bf16.msra.mxu1 %v2417_v37 }
 0x490   :  { %1993 = vmatprep.subr.bf16.mxu0 %v2419_v38  ;;  %2025 = vmatprep.subr.bf16.mxu1 %v2422_v43 }
 0x493   :  { %1995 = vmatpush1.bf16.msra.mxu0 %v2425_v47  ;;  %2027 = vmatpush1.bf16.msra.mxu1 %v2429_v48 }
 0x494   :  { %2029 = vmatprep.subr.bf16.mxu0 %v2338_v5  ;;  %2061 = vmatprep.subr.bf16.mxu1 %v2340_v9 }
 0x549   :  { %v928_v6 = vpop.f32.mrb[8].mxu0  ;;  %v999_v7 = vpop.f32.mrb[8].mxu1 }
 0x54a   :  { %v930_v11 = vpop.f32.mrb[9].mxu0  ;;  %v1001_v12 = vpop.f32.mrb[9].mxu1 }
 0x54b   :  { %v1008_v13 = vcombine.low %v928_v6, %v930_v11  ;;  %v1009_v15 = vcombine.low %v999_v7, %v1001_v12  ;;  %v1048_v11 = vld [vmem:[#allocation3 + $0x28] sm:$0xff] }
 0x54d   :  { %v1016_v16 = vrot.slane %v1008_v13, %v2472_v59  ;;  %v1023_v22 = vrot.slane %v1009_v15, %v2472_v59 }
 0x54f   :  { %v1024_v25 = vcombine.low %v1016_v16, %v1023_v22 }
 0x551   :  { %v1026_v29 = vadd.f32 %v1024_v25, %v861_v24 }
 0x553   :  { %v1638_v30 = vmul.f32 -1.442695, %v1026_v29  ;;  %v1034_v34 = vrot.slane %v1026_v29, 6 }
 0x555   :  { %2196 = vpow2.f32 %v1638_v30 }
 0x55f   :  { %v2197_v31 = vpop.eup %2196 }
 0x560   :  { %v1030_v33 = vadd.f32 1.0, %v2197_v31 }
 0x562   :  { %2198 = vrcp.f32 %v1030_v33 }
 0x563   :  { %2200 = vtanh.f32 %v1034_v34 }
 0x56c   :  { %v2199_v39 = vpop.eup %2198 }
 0x56d   :  { %v1038_v42 = vrot.slane %v2199_v39, 2  ;;  %v2201_v44 = vpop.eup %2200  ;;  %v1044_v51 = vrot.slane %v2199_v39, 4 }
 0x56e   :  { %v1041_v46 = vmul.f32 %v2201_v44, %v2199_v39  ;;  %v1422_v44 = vld [vmem:[#allocation3 + $0x38] sm:$0xff] }
 0x56f   :  { %v1040_v49 = vmul.f32 %v1038_v42, %v2596_v61 }
 0x571   :  { %v2636_v50 = vadd.f32 %v1041_v46, %v1040_v49 }
 0x573   :  { %2202 = vtanh.f32 %v2636_v50 }
 0x57d   :  { %v2203_v55 = vpop.eup %2202 }
 0x57e   :  { %v1046_v56 = vmul.f32 %v2203_v55, %v1044_v51 }
 0x580   :  { %1114 = vmatmul.mubr.f32.vlgmr.msra.gmra.mrb[10].mxu0 %v1046_v56  ;;  %1185 = vmatmul.mubr.f32.vlgmr.msra.gmra.mrb[10].mxu1 %v1046_v56 }
 0x581   :  { %2031 = vmatpush1.bf16.msra.mxu0 %v2342_v10  ;;  %2063 = vmatpush1.bf16.msra.mxu1 %v2345_v14 }
 0x582   :  { %2033 = vmatprep.subr.bf16.mxu0 %v2349_v18  ;;  %2065 = vmatprep.subr.bf16.mxu1 %v2351_v19 }
 0x583   :  { %1300 = vmatprep.mubr.f32.mxu0 %v2282_v1  ;;  %1371 = vmatprep.mubr.f32.mxu1 %v2282_v1 }
 0x585   :  { %2035 = vmatpush1.bf16.msra.mxu0 %v2354_v23  ;;  %2067 = vmatpush1.bf16.msra.mxu1 %v2358_v27 }
 0x586   :  { %2037 = vmatprep.subr.bf16.mxu0 %v2360_v28  ;;  %2069 = vmatprep.subr.bf16.mxu1 %v2362_v32 }
 0x589   :  { %2039 = vmatpush1.bf16.msra.mxu0 %v2365_v36  ;;  %2071 = vmatpush1.bf16.msra.mxu1 %v2369_v40 }
 0x58a   :  { %2041 = vmatprep.subr.bf16.mxu0 %v2371_v41  ;;  %2073 = vmatprep.subr.bf16.mxu1 %v2374_v45 }
 0x58d   :  { %2043 = vmatpush1.bf16.msra.mxu0 %v2377_v52  ;;  %2075 = vmatpush1.bf16.msra.mxu1 %v2381_v53 }
 0x58e   :  { %2045 = vmatprep.subr.bf16.mxu0 %v2383_v54  ;;  %2077 = vmatprep.subr.bf16.mxu1 %v2386_v58 }
 0x591   :  { %2047 = vmatpush1.bf16.msra.mxu0 %v2389_v0  ;;  %2079 = vmatpush1.bf16.msra.mxu1 %v2393_v2 }
 0x592   :  { %2049 = vmatprep.subr.bf16.mxu0 %v2395_v3  ;;  %2081 = vmatprep.subr.bf16.mxu1 %v2398_v8 }
 0x595   :  { %2051 = vmatpush1.bf16.msra.mxu0 %v2401_v17  ;;  %2083 = vmatpush1.bf16.msra.mxu1 %v2405_v20 }
 0x596   :  { %2053 = vmatprep.subr.bf16.mxu0 %v2407_v21  ;;  %2085 = vmatprep.subr.bf16.mxu1 %v2410_v26 }
 0x599   :  { %2055 = vmatpush1.bf16.msra.mxu0 %v2413_v35  ;;  %2087 = vmatpush1.bf16.msra.mxu1 %v2417_v37 }
 0x59a   :  { %2057 = vmatprep.subr.bf16.mxu0 %v2419_v38  ;;  %2089 = vmatprep.subr.bf16.mxu1 %v2422_v43 }
 0x59d   :  { %2059 = vmatpush1.bf16.msra.mxu0 %v2425_v47  ;;  %2091 = vmatpush1.bf16.msra.mxu1 %v2429_v48 }
 0x59e   :  { %2093 = vmatprep.subr.bf16.mxu0 %v2338_v5  ;;  %2125 = vmatprep.subr.bf16.mxu1 %v2340_v9 }
 0x653   :  { %v1115_v57 = vpop.f32.mrb[10].mxu0  ;;  %v1186_v60 = vpop.f32.mrb[10].mxu1 }
 0x654   :  { %v1117_v61 = vpop.f32.mrb[11].mxu0  ;;  %v1188_v62 = vpop.f32.mrb[11].mxu1 }
 0x655   :  { %v1195_v63 = vcombine.low %v1115_v57, %v1117_v61  ;;  %v1196_v4 = vcombine.low %v1186_v60, %v1188_v62 }
 0x657   :  { %v1203_v6 = vrot.slane %v1195_v63, %v2472_v59  ;;  %v1210_v7 = vrot.slane %v1196_v4, %v2472_v59 }
 0x659   :  { %v1211_v12 = vcombine.low %v1203_v6, %v1210_v7 }
 0x65b   :  { %v1213_v13 = vadd.f32 %v1211_v12, %v1048_v11 }
 0x65d   :  { %v1639_v15 = vmul.f32 -1.442695, %v1213_v13  ;;  %v1221_v5 = vrot.slane %v1213_v13, 6 }
 0x65f   :  { %2204 = vpow2.f32 %v1639_v15  ;;  %v1643_v15 = vld [vmem:[#allocation2] ss:$0 sm:$0xff] }
 0x669   :  { %v2205_v16 = vpop.eup %2204 }
 0x66a   :  { %v1217_v22 = vadd.f32 1.0, %v2205_v16 }
 0x66c   :  { %2206 = vrcp.f32 %v1217_v22 }
 0x66d   :  { %2208 = vtanh.f32 %v1221_v5 }
 0x676   :  { %v2207_v9 = vpop.eup %2206 }
 0x677   :  { %v1225_v24 = vrot.slane %v2207_v9, 2  ;;  %v2209_v25 = vpop.eup %2208  ;;  %v1231_v33 = vrot.slane %v2207_v9, 4 }
 0x678   :  { %v1228_v29 = vmul.f32 %v2209_v25, %v2207_v9 }
 0x679   :  { %v1227_v30 = vmul.f32 %v1225_v24, %v2636_v50 }
 0x67b   :  { %v1229_v31 = vadd.f32 %v1228_v29, %v1227_v30 }
 0x67d   :  { %2210 = vtanh.f32 %v1229_v31 }
 0x687   :  { %v2211_v34 = vpop.eup %2210 }
 0x688   :  { %v1233_v39 = vmul.f32 %v2211_v34, %v1231_v33 }
 0x68a   :  { %1301 = vmatmul.mubr.f32.vlgmr.msra.gmra.mrb[12].mxu0 %v1233_v39  ;;  %1372 = vmatmul.mubr.f32.vlgmr.msra.gmra.mrb[12].mxu1 %v1233_v39 }
 0x68b   :  { %2095 = vmatpush1.bf16.msra.mxu0 %v2342_v10  ;;  %2127 = vmatpush1.bf16.msra.mxu1 %v2345_v14 }
 0x68c   :  { %2097 = vmatprep.subr.bf16.mxu0 %v2349_v18  ;;  %2129 = vmatprep.subr.bf16.mxu1 %v2351_v19 }
 0x68d   :  { %1487 = vmatprep.mubr.f32.mxu0 %v2282_v1  ;;  %1558 = vmatprep.mubr.f32.mxu1 %v2282_v1 }
 0x68f   :  { %2099 = vmatpush1.bf16.msra.mxu0 %v2354_v23  ;;  %2131 = vmatpush1.bf16.msra.mxu1 %v2358_v27 }
 0x690   :  { %2101 = vmatprep.subr.bf16.mxu0 %v2360_v28  ;;  %2133 = vmatprep.subr.bf16.mxu1 %v2362_v32  ;;  %v1235_v32 = vld [vmem:[#allocation3 + $0x30] sm:$0xff] }
 0x693   :  { %2103 = vmatpush1.bf16.msra.mxu0 %v2365_v36  ;;  %2135 = vmatpush1.bf16.msra.mxu1 %v2369_v40 }
 0x694   :  { %2105 = vmatprep.subr.bf16.mxu0 %v2371_v41  ;;  %2137 = vmatprep.subr.bf16.mxu1 %v2374_v45 }
 0x697   :  { %2107 = vmatpush1.bf16.msra.mxu0 %v2377_v52  ;;  %2139 = vmatpush1.bf16.msra.mxu1 %v2381_v53 }
 0x698   :  { %2109 = vmatprep.subr.bf16.mxu0 %v2383_v54  ;;  %2141 = vmatprep.subr.bf16.mxu1 %v2386_v58 }
 0x69b   :  { %2111 = vmatpush1.bf16.msra.mxu0 %v2389_v0  ;;  %2143 = vmatpush1.bf16.msra.mxu1 %v2393_v2 }
 0x69c   :  { %2113 = vmatprep.subr.bf16.mxu0 %v2395_v3  ;;  %2145 = vmatprep.subr.bf16.mxu1 %v2398_v8 }
 0x69f   :  { %2115 = vmatpush1.bf16.msra.mxu0 %v2401_v17  ;;  %2147 = vmatpush1.bf16.msra.mxu1 %v2405_v20 }
 0x6a0   :  { %2117 = vmatprep.subr.bf16.mxu0 %v2407_v21  ;;  %2149 = vmatprep.subr.bf16.mxu1 %v2410_v26 }
 0x6a3   :  { %2119 = vmatpush1.bf16.msra.mxu0 %v2413_v35  ;;  %2151 = vmatpush1.bf16.msra.mxu1 %v2417_v37 }
 0x6a4   :  { %2121 = vmatprep.subr.bf16.mxu0 %v2419_v38  ;;  %2153 = vmatprep.subr.bf16.mxu1 %v2422_v43 }
 0x6a7   :  { %2123 = vmatpush1.bf16.msra.mxu0 %v2425_v47  ;;  %2155 = vmatpush1.bf16.msra.mxu1 %v2429_v48 }
 0x75d   :  { %v1302_v1 = vpop.f32.mrb[12].mxu0  ;;  %v1373_v10 = vpop.f32.mrb[12].mxu1 }
 0x75e   :  { %v1304_v14 = vpop.f32.mrb[13].mxu0  ;;  %v1375_v18 = vpop.f32.mrb[13].mxu1 }
 0x75f   :  { %v1382_v19 = vcombine.low %v1302_v1, %v1304_v14  ;;  %v1383_v23 = vcombine.low %v1373_v10, %v1375_v18 }
 0x761   :  { %v1390_v27 = vrot.slane %v1382_v19, %v2472_v59  ;;  %v1397_v28 = vrot.slane %v1383_v23, %v2472_v59 }
 0x763   :  { %v1398_v36 = vcombine.low %v1390_v27, %v1397_v28 }
 0x765   :  { %v1400_v40 = vadd.f32 %v1398_v36, %v1235_v32 }
 0x767   :  { %v1640_v41 = vmul.f32 -1.442695, %v1400_v40  ;;  %v1408_v53 = vrot.slane %v1400_v40, 6 }
 0x769   :  { %2212 = vpow2.f32 %v1640_v41 }
 0x773   :  { %v2213_v45 = vpop.eup %2212 }
 0x774   :  { %v1404_v52 = vadd.f32 1.0, %v2213_v45 }
 0x776   :  { %2214 = vrcp.f32 %v1404_v52 }
 0x777   :  { %2216 = vtanh.f32 %v1408_v53 }
 0x780   :  { %v2215_v54 = vpop.eup %2214 }
 0x781   :  { %v1412_v58 = vrot.slane %v2215_v54, 2  ;;  %v2217_v0 = vpop.eup %2216  ;;  %v1418_v17 = vrot.slane %v2215_v54, 4 }
 0x782   :  { %v1415_v2 = vmul.f32 %v2217_v0, %v2215_v54 }
 0x783   :  { %v1414_v3 = vmul.f32 %v1412_v58, %v1229_v31 }
 0x785   :  { %v1416_v8 = vadd.f32 %v1415_v2, %v1414_v3 }
 0x787   :  { %2218 = vtanh.f32 %v1416_v8 }
 0x791   :  { %v2219_v20 = vpop.eup %2218 }
 0x792   :  { %v1420_v21 = vmul.f32 %v2219_v20, %v1418_v17 }
 0x794   :  { %1488 = vmatmul.mubr.f32.vlgmr.msra.gmra.mrb[14].mxu0 %v1420_v21  ;;  %1559 = vmatmul.mubr.f32.vlgmr.msra.gmra.mrb[14].mxu1 %v1420_v21 }
 0x867   :  { %v1489_v26 = vpop.f32.mrb[14].mxu0  ;;  %v1560_v35 = vpop.f32.mrb[14].mxu1 }
 0x868   :  { %v1491_v37 = vpop.f32.mrb[15].mxu0  ;;  %v1562_v38 = vpop.f32.mrb[15].mxu1 }
 0x869   :  { %v1569_v43 = vcombine.low %v1489_v26, %v1491_v37  ;;  %v1570_v47 = vcombine.low %v1560_v35, %v1562_v38 }
 0x86b   :  { %v1577_v48 = vrot.slane %v1569_v43, %v2472_v59  ;;  %v1584_v42 = vrot.slane %v1570_v47, %v2472_v59  ;;  %v1642_v59 = vld [vmem:[%s2720_s2] ss:$0 sm:$0xff] }
 0x86d   :  { %v1585_v46 = vcombine.low %v1577_v48, %v1584_v42 }
 0x86f   :  { %v1587_v49 = vadd.f32 %v1585_v46, %v1422_v44 }
 0x871   :  { %v1641_v50 = vmul.f32 -1.442695, %v1587_v49  ;;  %v1595_v56 = vrot.slane %v1587_v49, 6 }
 0x873   :  { %2220 = vpow2.f32 %v1641_v50 }
 0x87d   :  { %v2221_v51 = vpop.eup %2220 }
 0x87e   :  { %v1591_v55 = vadd.f32 1.0, %v2221_v51 }
 0x880   :  { %2222 = vrcp.f32 %v1591_v55 }
 0x881   :  { %2224 = vtanh.f32 %v1595_v56 }
 0x88a   :  { %v2223_v57 = vpop.eup %2222 }
 0x88b   :  { %v1599_v60 = vrot.slane %v2223_v57, 2  ;;  %v2225_v61 = vpop.eup %2224  ;;  %v1605_v6 = vrot.slane %v2223_v57, 4 }
 0x88c   :  { %v1602_v63 = vmul.f32 %v2225_v61, %v2223_v57 }
 0x88d   :  { %v1601_v62 = vmul.f32 %v1599_v60, %v1416_v8 }
 0x88f   :  { %v1603_v4 = vadd.f32 %v1602_v63, %v1601_v62 }
 0x891   :  { %2226 = vtanh.f32 %v1603_v4 }
 0x89b   :  { %v2227_v7 = vpop.eup %2226 }
 0x89c   :  { %v1607_v11 = vmul.f32 %v2227_v7, %v1605_v6 }
 0x89e   :  { %v1614_v12 = vmul.f32 %v1642_v59, %v1607_v11 }
 0x8a0   :  { %v1616_v13 = vsel %vm1615_vm0, %v1614_v12, 0.0 }
 0x8a1   :  { %1617 = vadd.xlane.f32.xlu0 %v1616_v13 }
 0x92e   :  { %v1618_v16 = vpop.xlane.xlu0 %1617 }
 0x92f   :  { %v1625_v22 = vadd.f32 %v1643_v15, %v1618_v16 }
 0x931   :  { %1627 = vst.msk [vmem:[%s2722_s4] sm:$0x3] %vm1626_vm1, %v1625_v22 }
 0x932   :  { %1632 = vsyncpa [#allocation4], 1 }
 0x933   :  { %1633 = vsyncpa [#allocation6], 1 }

</bundles_post_ra>
